<compile_context>
chip_gen: v7x
topology: tpu7x:2x2x1
jax: 0.10.0
libtpu: 0.0.40
codegen_flags: <defaults>
</compile_context>

<pallas_src>
import math
import numpy as np
import jax
import jax.numpy as jnp
from jax.experimental import pallas as pl
from jax.experimental.pallas import tpu as pltpu

# haar wavelet reconstruction filters (pywt.Wavelet('haar').rec_lo / rec_hi)
_SQRT2_INV = 1.0 / math.sqrt(2.0)
HAAR_REC_LO = [_SQRT2_INV, _SQRT2_INV]
HAAR_REC_HI = [_SQRT2_INV, -_SQRT2_INV]


def build_dwt_matrices(input_length, band_low=HAAR_REC_LO, band_high=HAAR_REC_HI,
                       dtype=jnp.float32):
    """Mirror of DWT_1D.get_matrix(): returns (matrix_low, matrix_high)."""
    band_length = len(band_low)
    assert band_length == len(band_high) and band_length % 2 == 0
    band_length_half = band_length // 2

    L1 = input_length
    L = L1 // 2
    matrix_h = np.zeros((L, L1 + band_length - 2), dtype=np.float64)
    matrix_g = np.zeros((L1 - L, L1 + band_length - 2), dtype=np.float64)
    end = None if band_length_half == 1 else -band_length_half + 1

    index = 0
    for i in range(L):
        for j in range(band_length):
            matrix_h[i, index + j] = band_low[j]
        index += 2
    index = 0
    for i in range(L1 - L):
        for j in range(band_length):
            matrix_g[i, index + j] = band_high[j]
        index += 2

    matrix_h = matrix_h[:, band_length_half - 1:end]
    matrix_g = matrix_g[:, band_length_half - 1:end]
    return (jnp.asarray(matrix_h, dtype=dtype),
            jnp.asarray(matrix_g, dtype=dtype))


# ---------------------------------------------------------------------------
# Hardware / feature probes (never wrap the pallas_call itself).
# ---------------------------------------------------------------------------
def _probe_pipeline_mode():
    """Constructor-level check that BlockSpec accepts pipeline_mode=pl.Buffered."""
    try:
        pl.BlockSpec((8, 128), lambda i: (0, 0), pipeline_mode=pl.Buffered(1))
        return True
    except Exception:  # older jax: missing kwarg / missing pl.Buffered
        return False


_HAS_PIPELINE_MODE = _probe_pipeline_mode()


def _tpu_hw():
    """Best-effort (vmem_capacity_bytes, dual_tensorcore) with safe fallbacks."""
    try:
        kind = jax.devices()[0].device_kind.lower()
    except Exception:
        kind = ""
    dual_tc = "v7" in kind  # v7x: 2 TensorCores per chip share the grid
    try:
        vmem_cap = int(pltpu.get_tpu_info().vmem_capacity_bytes)
    except Exception:
        vmem_cap = (64 << 20) if dual_tc else (128 << 20)
    vmem_cap = max(32 << 20, min(vmem_cap, 128 << 20))
    return vmem_cap, dual_tc


# ---------------------------------------------------------------------------
# Kernels.
# ---------------------------------------------------------------------------
def _dwt1d_kernel_direct(x_ref, wl_ref, wh_ref, lo_ref, hi_ref):
    """Single K tile: x (tm, Lin) against two (Lin, Lh) weights -> two outputs."""
    x = x_ref[...]
    lo_ref[...] = jnp.dot(x, wl_ref[...],
                          preferred_element_type=jnp.float32).astype(lo_ref.dtype)
    hi_ref[...] = jnp.dot(x, wh_ref[...],
                          preferred_element_type=jnp.float32).astype(hi_ref.dtype)


def _dwt1d_kernel_ktiled(x_ref, wl_ref, wh_ref, lo_ref, hi_ref, acc_lo, acc_hi):
    """K-tiled contraction with f32 VMEM accumulators (bounded weight slab)."""
    k = pl.program_id(1)

    @pl.when(k == 0)
    def _():
        acc_lo[...] = jnp.zeros_like(acc_lo)
        acc_hi[...] = jnp.zeros_like(acc_hi)

    x = x_ref[...]
    acc_lo[...] += jnp.dot(x, wl_ref[...], preferred_element_type=jnp.float32)
    acc_hi[...] += jnp.dot(x, wh_ref[...], preferred_element_type=jnp.float32)

    @pl.when(k == pl.num_programs(1) - 1)
    def _():
        lo_ref[...] = acc_lo[...].astype(lo_ref.dtype)
        hi_ref[...] = acc_hi[...].astype(hi_ref.dtype)


# ---------------------------------------------------------------------------
# Wrapper.
# ---------------------------------------------------------------------------
def dwt_1d_forward(x, matrix_low, matrix_high, *, tile_m=None, compute_dtype=None):
    """x: (N, C, Lin) -> (lfc, hfc), each (N, C, Lin // 2).

    compute_dtype: optionally cast x and the analysis matrices (e.g.
    jnp.bfloat16 on v6e/v7x for ~2x MXU throughput and half the input/weight
    traffic; accumulation stays f32).  Default None keeps the input dtype,
    matching PyTorch f32 numerics.
    """
    N, C, Lin = x.shape
    # PyTorch's DWT_1D handles odd Length with asymmetric L/H lengths; we only
    # support the even case (same as the declared (N, C, Length/2) outputs).
    assert Lin % 2 == 0, "DWT_1D Pallas kernel requires an even Length"
    Lh = Lin // 2
    M = N * C

    # TODO(synk): exploit the banded structure of the analysis matrices (haar
    # has only 2 nonzeros per row) with an output-column grid axis to cut FLOPs
    # from O(M*Lin^2) to O(M*Lin*band_length); dense matmul kept for generality
    # over arbitrary (matrix_low, matrix_high).
    wl = matrix_low.T   # (Lin, Lh)
    wh = matrix_high.T  # (Lin, Lh)
    x2d = x.reshape(M, Lin)
    out_dtype = x.dtype
    if compute_dtype is not None:
        wl = wl.astype(compute_dtype)
        wh = wh.astype(compute_dtype)
        x2d = x2d.astype(compute_dtype)

    x_item = x2d.dtype.itemsize
    w_item = wl.dtype.itemsize
    o_item = np.dtype(out_dtype).itemsize

    vmem_cap, dual_tc = _tpu_hw()
    vmem_limit = int(0.85 * vmem_cap)          # leave chip-level headroom
    budget = int(0.80 * vmem_limit)            # leave compiler-internal scratch room

    # Single-buffer the constant weight blocks only when the slab is big enough
    # to matter (keeps the tiny/demo path on the plain, well-trodden specs).
    w_slab = 2 * Lin * Lh * w_item
    use_single_buf_w = _HAS_PIPELINE_MODE and w_slab >= (2 << 20)
    w_bufs = 1 if use_single_buf_w else 2

    # ---- row (M) tile selection -------------------------------------------
    desired = 512 if tile_m is None else int(tile_m)
    if dual_tc and M >= 64:
        # >= 2 M tiles per TensorCore on dual-TC parts: both cores busy and the
        # software pipeline keeps prefetch/writeback overlapped.
        desired = min(desired, pl.cdiv(M, 4))
    if desired >= M:
        tm = M                                  # single full-extent tile
    elif desired >= 256:
        tm = (desired // 256) * 256             # MXU-friendly (2x256^2 / 4x128^2)
    elif desired >= 128:
        tm = (desired // 128) * 128
    else:
        tm = max(8, (desired // 8) * 8)

    # ---- K (contraction) tile selection ------------------------------------
    def _footprint(tm_, tk_, kt_, wb_):
        f = 2 * tm_ * tk_ * x_item              # x tiles, double-buffered
        f += 2 * wb_ * tk_ * Lh * w_item        # W_lo + W_hi blocks
        f += 2 * 2 * tm_ * Lh * o_item          # lo + hi output tiles, double-buffered
        if kt_ > 1:
            f += 2 * tm_ * Lh * 4               # f32 accumulators
        return f

    tk, k_tiles = Lin, 1
    if _footprint(tm, Lin, 1, w_bufs) > budget and Lin % 128 == 0 and Lin > 128:
        best = None
        for mult in range(Lin // 128, 0, -1):
            cand = mult * 128
            if Lin % cand:
                continue
            if _footprint(tm, cand, Lin // cand, 2) <= budget:
                best = cand
                break
        tk = best if best is not None else 128
        k_tiles = Lin // tk
    # Last resort: shrink the row tile until the working set fits.
    while (_footprint(tm, tk, k_tiles, w_bufs if k_tiles == 1 else 2) > budget
           and tm > 8):
        tm = max(8, (tm // 2 // 8) * 8)

    m_tiles = pl.cdiv(M, tm)

    # ---- specs / grid -------------------------------------------------------
    if k_tiles == 1:
        grid = (m_tiles,)
        if use_single_buf_w:
            w_spec_lo = pl.BlockSpec((Lin, Lh), lambda i: (0, 0),
                                     pipeline_mode=pl.Buffered(1))
            w_spec_hi = pl.BlockSpec((Lin, Lh), lambda i: (0, 0),
                                     pipeline_mode=pl.Buffered(1))
        else:
            w_spec_lo = pl.BlockSpec((Lin, Lh), lambda i: (0, 0))
            w_spec_hi = pl.BlockSpec((Lin, Lh), lambda i: (0, 0))
        in_specs = [pl.BlockSpec((tm, Lin), lambda i: (i, 0)), w_spec_lo, w_spec_hi]
        out_specs = [pl.BlockSpec((tm, Lh), lambda i: (i, 0)),
                     pl.BlockSpec((tm, Lh), lambda i: (i, 0))]
        scratch_shapes = ()
        dim_sem = ("parallel",)
        kernel = _dwt1d_kernel_direct
    else:
        grid = (m_tiles, k_tiles)
        in_specs = [pl.BlockSpec((tm, tk), lambda i, k: (i, k)),
                    pl.BlockSpec((tk, Lh), lambda i, k: (k, 0)),
                    pl.BlockSpec((tk, Lh), lambda i, k: (k, 0))]
        out_specs = [pl.BlockSpec((tm, Lh), lambda i, k: (i, 0)),
                     pl.BlockSpec((tm, Lh), lambda i, k: (i, 0))]
        scratch_shapes = (pltpu.VMEM((tm, Lh), jnp.float32),
                          pltpu.VMEM((tm, Lh), jnp.float32))
        dim_sem = ("parallel", "arbitrary")
        kernel = _dwt1d_kernel_ktiled

    cost = pl.CostEstimate(
        flops=4 * M * Lin * Lh,                                   # two (M,Lin)@(Lin,Lh)
        transcendentals=0,
        bytes_accessed=(M * Lin * x_item + 2 * Lin * Lh * w_item
                        + 2 * M * Lh * o_item),
    )

    lo2d, hi2d = pl.pallas_call(
        kernel,
        out_shape=(jax.ShapeDtypeStruct((M, Lh), out_dtype),
                   jax.ShapeDtypeStruct((M, Lh), out_dtype)),
        grid=grid,
        in_specs=in_specs,
        out_specs=out_specs,
        scratch_shapes=scratch_shapes,
        compiler_params=pltpu.CompilerParams(
            dimension_semantics=dim_sem,
            vmem_limit_bytes=vmem_limit,
        ),
        cost_estimate=cost,
    )(x2d, wl, wh)

    return lo2d.reshape(N, C, Lh), hi2d.reshape(N, C, Lh)


if __name__ == "__main__":
    # Small shapes consistent with (N, C, Length)
    N, C, Lin = 2, 4, 16
    key = jax.random.PRNGKey(0)
    x = jax.random.normal(key, (N, C, Lin), dtype=jnp.float32)

    matrix_low, matrix_high = build_dwt_matrices(Lin)

    lfc, hfc = dwt_1d_forward(x, matrix_low, matrix_high)
    lfc, hfc = jax.block_until_ready((lfc, hfc))

    # Pure-JAX reference (same semantics as torch.matmul(input, M.t()))
    ref_lo = jnp.matmul(x, matrix_low.T)
    ref_hi = jnp.matmul(x, matrix_high.T)
    assert lfc.shape == (N, C, Lin // 2) and hfc.shape == (N, C, Lin // 2)
    np.testing.assert_allclose(np.asarray(lfc), np.asarray(ref_lo), rtol=1e-5, atol=1e-5)
    np.testing.assert_allclose(np.asarray(hfc), np.asarray(ref_hi), rtol=1e-5, atol=1e-5)

    print("KERNEL_OK")
</pallas_src>

<mosaic_0001>
module attributes {stable_mosaic.version = 11 : i64} {
  func.func @_dwt1d_kernel_direct(%arg0: i32, %arg1: memref<8x16xf32, #tpu.memory_space<vmem>>, %arg2: memref<16x8xf32, #tpu.memory_space<vmem>>, %arg3: memref<16x8xf32, #tpu.memory_space<vmem>>, %arg4: memref<8x8xf32, #tpu.memory_space<vmem>>, %arg5: memref<8x8xf32, #tpu.memory_space<vmem>>) attributes {dimension_semantics = [#tpu.dimension_semantics<parallel>], iteration_bounds = array<i64: 1>, scalar_prefetch = 0 : i64, scratch_operands = 0 : i64, tpu.core_type = #tpu.core_type<tc>, window_params = [{transform_indices = @transform_0, window_bounds = array<i64: 8, 16>}, {pipeline_mode = #tpu.pipeline_mode<synchronous>, transform_indices = @transform_1, window_bounds = array<i64: 16, 8>}, {pipeline_mode = #tpu.pipeline_mode<synchronous>, transform_indices = @transform_2, window_bounds = array<i64: 16, 8>}, {transform_indices = @transform_3, window_bounds = array<i64: 8, 8>}, {transform_indices = @transform_4, window_bounds = array<i64: 8, 8>}]} {
    %c0 = arith.constant 0 : index
    %c0_0 = arith.constant 0 : index
    %0 = vector.load %arg1[%c0, %c0_0] : memref<8x16xf32, #tpu.memory_space<vmem>>, vector<8x16xf32>
    %c0_1 = arith.constant 0 : index
    %c0_2 = arith.constant 0 : index
    %1 = vector.load %arg2[%c0_1, %c0_2] : memref<16x8xf32, #tpu.memory_space<vmem>>, vector<16x8xf32>
    %cst = arith.constant dense<0.000000e+00> : vector<8x8xf32>
    %2 = tpu.matmul %0, %1, %cst {dimension_numbers = #tpu.dot_dimension_numbers<[1], [0], [0], [1], [0, 0, 1, 1], [], []>} : vector<8x16xf32>, vector<16x8xf32>, vector<8x8xf32> -> vector<8x8xf32>
    %c0_3 = arith.constant 0 : index
    %c0_4 = arith.constant 0 : index
    %3 = vector.load %arg4[%c0_3, %c0_4] : memref<8x8xf32, #tpu.memory_space<vmem>>, vector<8x8xf32>
    tpu.vector_store %arg4[%c0_3, %c0_4], %2 {strides = array<i32>} : memref<8x8xf32, #tpu.memory_space<vmem>>, vector<8x8xf32>,
    %c0_5 = arith.constant 0 : index
    %c0_6 = arith.constant 0 : index
    %4 = vector.load %arg3[%c0_5, %c0_6] : memref<16x8xf32, #tpu.memory_space<vmem>>, vector<16x8xf32>
    %cst_7 = arith.constant dense<0.000000e+00> : vector<8x8xf32>
    %5 = tpu.matmul %0, %4, %cst_7 {dimension_numbers = #tpu.dot_dimension_numbers<[1], [0], [0], [1], [0, 0, 1, 1], [], []>} : vector<8x16xf32>, vector<16x8xf32>, vector<8x8xf32> -> vector<8x8xf32>
    %c0_8 = arith.constant 0 : index
    %c0_9 = arith.constant 0 : index
    %6 = vector.load %arg5[%c0_8, %c0_9] : memref<8x8xf32, #tpu.memory_space<vmem>>, vector<8x8xf32>
    tpu.vector_store %arg5[%c0_8, %c0_9], %5 {strides = array<i32>} : memref<8x8xf32, #tpu.memory_space<vmem>>, vector<8x8xf32>,
    return
  }
  func.func @transform_0(%arg0: i32) -> (i32, i32) {
    %c0_i32 = arith.constant 0 : i32
    %c0_i32_0 = arith.constant 0 : i32
    return %arg0, %c0_i32 : i32, i32
  }
  func.func @transform_1(%arg0: i32) -> (i32, i32) {
    %c0_i32 = arith.constant 0 : i32
    %c0_i32_0 = arith.constant 0 : i32
    %c0_i32_1 = arith.constant 0 : i32
    return %c0_i32, %c0_i32_0 : i32, i32
  }
  func.func @transform_2(%arg0: i32) -> (i32, i32) {
    %c0_i32 = arith.constant 0 : i32
    %c0_i32_0 = arith.constant 0 : i32
    %c0_i32_1 = arith.constant 0 : i32
    return %c0_i32, %c0_i32_0 : i32, i32
  }
  func.func @transform_3(%arg0: i32) -> (i32, i32) {
    %c0_i32 = arith.constant 0 : i32
    %c0_i32_0 = arith.constant 0 : i32
    return %arg0, %c0_i32 : i32, i32
  }
  func.func @transform_4(%arg0: i32) -> (i32, i32) {
    %c0_i32 = arith.constant 0 : i32
    %c0_i32_0 = arith.constant 0 : i32
    return %arg0, %c0_i32 : i32, i32
  }
}

</mosaic_0001>

<bundles_post_ra>
// kernel: tpu_custom_call.1
= control target key start
LH: loop header
LB: loop body
LE: loop exit
PB: predicated region body
PF: predicated region fallthrough
CT: control target
= control target key end

     0   :  { %10 = vsyncpa [#allocation3], 0  ;;  %s505_s0 = inlined_call_operand.hbm [shape: f32[8,16], index: 0, kind: input, shape index: {}]   ;;  %s506_s1 = inlined_call_operand.hbm [shape: f32[16,8], index: 1, kind: input, shape index: {}]   ;;  %s507_s2 = inlined_call_operand.hbm [shape: f32[16,8], index: 2, kind: input, shape index: {}]   ;;  %s508_s3 = inlined_call_operand.hbm [shape: f32[8,8], index: 3, kind: output, shape index: {0}]   ;;  %s509_s4 = inlined_call_operand.hbm [shape: f32[8,8], index: 4, kind: output, shape index: {1}]  }
   0x1   :  { %11 = vsyncpa [#allocation6], 0 }
   0x2   :  { %12 = vsyncpa [#allocation4], 0 }
   0x3   :  { %13 = vsyncpa [#allocation10], 0  ;;  %s395_s15 = smov [#allocation5]   ;;  %s277_s19 = scalar_lea.hbm %s506_s1, 256 }
   0x4   :  { %s29_s16 = sshll.u32 %s395_s15, 4  ;;  %p278_p0 = scmp.ne.s32.totalorder %s506_s1, %s277_s19  ;;  %s30_s16 = int_to_ptr.vmem [resolvable:$true] %s29_s16 }
   0x5   :  { %p281_p1 = scmp.lt.u32.totalorder %s277_s19, %s506_s1 }
   0x7   :  { %p283_p2 = pnand %p281_p1, %p278_p0 }
   0x9   :  { %286 = shalt.err (!%p283_p2)
}
   0xa   :  { %s287_s24 = scalar_lea.vmem %s30_s16, 256  ;;  %p292_p4 = scmp.lt.s32.totalorder %s30_s16, %s30_s16 }
   0xb   :  { %p288_p3 = scmp.ne.s32.totalorder %s30_s16, %s287_s24  ;;  %p293_p5 = scmp.lt.s32.totalorder %s287_s24, %s287_s24 }
   0xd   :  { %p294_p6 = por %p293_p5, %p292_p4 }
   0xf   :  { %p295_p7 = pnand %p294_p6, %p288_p3 }
  0x11   :  { %298 = shalt.err (!%p295_p7)
}
  0x12   :  { %s396_s25 = smov 128   ;;  %s397_s26 = smov 8  }
  0x13   :  { %35 = dma.hbm_to_vmem [thread:$0]  %s506_s1, 256, %s30_s16, [#allocation6], %s396_s25, %s396_s25, %s397_s26  }
  0x14   :  { %s398_s29 = smov [#allocation2]   ;;  %s399_s5 = smov [#allocation7]  }
  0x15   :  { %s20_s30 = sshll.u32 %s398_s29, 4  ;;  %s41_s6 = sshll.u32 %s399_s5, 4  ;;  %s21_s30 = int_to_ptr.vmem [resolvable:$true] %s20_s30  ;;  %s42_s6 = int_to_ptr.vmem [resolvable:$true] %s41_s6 }
  0x16   :  { %s299_s9 = scalar_lea.hbm %s505_s0, 128 }
  0x17   :  { %p300_p8 = scmp.ne.s32.totalorder %s505_s0, %s299_s9  ;;  %p303_p9 = scmp.lt.u32.totalorder %s299_s9, %s505_s0 }
  0x19   :  { %p305_p10 = pnand %p303_p9, %p300_p8 }
  0x1b   :  { %308 = shalt.err (!%p305_p10)
}
  0x1c   :  { %s309_s1 = scalar_lea.vmem %s21_s30, 128  ;;  %p314_p12 = scmp.lt.s32.totalorder %s21_s30, %s21_s30 }
  0x1d   :  { %p310_p11 = scmp.ne.s32.totalorder %s21_s30, %s309_s1  ;;  %p315_p13 = scmp.lt.s32.totalorder %s309_s1, %s309_s1 }
  0x1f   :  { %p316_p0 = por %p315_p13, %p314_p12 }
  0x21   :  { %p317_p1 = pnand %p316_p0, %p310_p11 }
  0x23   :  { %320 = shalt.err (!%p317_p1)
}
  0x24   :  { %23 = dma.hbm_to_vmem [thread:$0]  %s505_s0, 128, %s21_s30, [#allocation3]  }
  0x25   :  { %s321_s18 = scalar_lea.hbm %s507_s2, 256 }
  0x26   :  { %p322_p2 = scmp.ne.s32.totalorder %s507_s2, %s321_s18  ;;  %p325_p3 = scmp.lt.u32.totalorder %s321_s18, %s507_s2 }
  0x28   :  { %p327_p4 = pnand %p325_p3, %p322_p2 }
  0x2a   :  { %330 = shalt.err (!%p327_p4)
}
  0x2b   :  { %s331_s23 = scalar_lea.vmem %s42_s6, 256  ;;  %p336_p6 = scmp.lt.s32.totalorder %s42_s6, %s42_s6 }
  0x2c   :  { %p332_p5 = scmp.ne.s32.totalorder %s42_s6, %s331_s23  ;;  %p337_p7 = scmp.lt.s32.totalorder %s331_s23, %s331_s23 }
  0x2e   :  { %p338_p8 = por %p337_p7, %p336_p6 }
  0x30   :  { %p339_p9 = pnand %p338_p8, %p332_p5 }
  0x32   :  { %342 = shalt.err (!%p339_p9)
}
  0x33   :  { %47 = dma.hbm_to_vmem [thread:$0]  %s507_s2, 256, %s42_s6, [#allocation6], %s396_s25, %s396_s25, %s397_s26  }
  0x34   :  { %387 = dma.done.wait [#allocation3], 128  }
  0x35   :  { %388 = vsyncadd [#allocation3], 4294967168 }
  0x36   :  { %389 = dma.done.wait [#allocation6], 512  }
  0x37   :  { %390 = vsyncadd [#allocation6], 4294966784  ;;  %v400_v0 = vmov 0.0|0.0   ;;  %vm401_vm0 = vmmov 0   ;;  %v402_v1 = vmov 0.0   ;;  %v58_v2 = vld [vmem:[#allocation5] sm:$0xff] }
  0x38   :  { %261 = vmatprep.subr.bf16.mxu0 %v400_v0  ;;  %264 = vmatprep.subr.bf16.mxu1 %v400_v0  ;;  %v59_v3 = vld [vmem:[#allocation5 + $0x8] sm:$0xff]  ;;  %v136_v4 = vld [vmem:[#allocation7] sm:$0xff]  ;;  %v137_v6 = vld [vmem:[#allocation7 + $0x8] sm:$0xff]  ;;  %vm60_vm1 = vcmask 130048   ;;  %s403_s2 = smov [#allocation8]   ;;  %s404_s26 = smov [#allocation9]  }
  0x39   :  { %251 = vmatprep.mubr.msk.f32.mxu0 %vm401_vm0, %v402_v1  ;;  %258 = vmatprep.mubr.msk.f32.mxu1 %vm401_vm0, %v402_v1  ;;  %v262_v5 = vpack.c.bf16 %v59_v3, %v58_v2  ;;  %v265_v7 = vpack.c.bf16 %v137_v6, %v136_v4  ;;  %v57_v8 = vld [vmem:[#allocation2] sm:$0xff]  ;;  %s215_s25 = sshll.u32 %s403_s2, 4  ;;  %s225_s27 = sshll.u32 %s404_s26, 4  ;;  %vm134_vm2 = vcmask 64512   ;;  %s216_s25 = int_to_ptr.vmem [resolvable:$true] %s215_s25  ;;  %s472_s27 = int_to_ptr.vmem [resolvable:$true] %s225_s27 }
  0x3a   :  { %s343_s28 = scalar_lea.vmem %s216_s25, 128  ;;  %p348_p11 = scmp.lt.s32.totalorder %s216_s25, %s216_s25 }
  0x3b   :  { %263 = vmatpush3.bf16.msra.mxu0 %v262_v5  ;;  %266 = vmatpush3.bf16.msra.mxu1 %v265_v7  ;;  %p344_p10 = scmp.ne.s32.totalorder %s216_s25, %s343_s28  ;;  %p349_p12 = scmp.lt.s32.totalorder %s343_s28, %s343_s28 }
  0x3d   :  { %p350_p13 = por %p349_p12, %p348_p11 }
  0x3e   :  { %252 = vmatmul.mubr.msk.f32.vlgmr.msra.gmra.mrb[0].mxu0 %vm60_vm1, %v57_v8  ;;  %259 = vmatmul.mubr.msk.f32.vlgmr.msra.gmra.mrb[0].mxu1 %vm60_vm1, %v57_v8 }
  0x3f   :  { %p351_p0 = pnand %p350_p13, %p344_p10 }
 0x111   :  { %v130_v9 = vpop.f32.mrb[0].mxu0  ;;  %v204_v10 = vpop.f32.mrb[0].mxu1 }
 0x112   :  { %v253_v11 = vpop.f32.mrb[1].mxu0  ;;  %135 = vst.msk [vmem:[#allocation8] sm:$0xff] %vm134_vm2, %v130_v9  ;;  %v260_v12 = vpop.f32.mrb[1].mxu1 }
 0x113   :  { %354 = shalt.err (!%p351_p0)
}
 0x114   :  { %s355_s5 = scalar_lea.hbm %s508_s3, 128 }
 0x115   :  { %p356_p1 = scmp.ne.s32.totalorder %s508_s3, %s355_s5  ;;  %p359_p2 = scmp.lt.u32.totalorder %s355_s5, %s508_s3 }
 0x117   :  { %p361_p3 = pnand %p359_p2, %p356_p1 }
 0x119   :  { %364 = shalt.err (!%p361_p3)
}
 0x11a   :  { %218 = dma.vmem_to_hbm [thread:$0]  %s216_s25, 128, %s508_s3, [#allocation4]   ;;  %208 = vst.msk [vmem:[#allocation9] sm:$0xff] %vm134_vm2, %v204_v10 }
 0x11b   :  { %s365_s12 = scalar_lea.vmem %s472_s27, 128  ;;  %p370_p5 = scmp.lt.s32.totalorder %s472_s27, %s472_s27 }
 0x11c   :  { %p366_p4 = scmp.ne.s32.totalorder %s472_s27, %s365_s12  ;;  %p371_p6 = scmp.lt.s32.totalorder %s365_s12, %s365_s12 }
 0x11e   :  { %p372_p7 = por %p371_p6, %p370_p5 }
 0x120   :  { %p373_p8 = pnand %p372_p7, %p366_p4 }
 0x122   :  { %376 = shalt.err (!%p373_p8)
}
 0x123   :  { %s377_s14 = scalar_lea.hbm %s509_s4, 128 }
 0x124   :  { %p378_p9 = scmp.ne.s32.totalorder %s509_s4, %s377_s14  ;;  %p381_p10 = scmp.lt.u32.totalorder %s377_s14, %s509_s4 }
 0x126   :  { %p383_p11 = pnand %p381_p10, %p378_p9 }
 0x128   :  { %386 = shalt.err (!%p383_p11)
}
 0x129   :  { %228 = dma.vmem_to_hbm [thread:$0]  %s472_s27, 128, %s509_s4, [#allocation10]  }
 0x12a   :  { %391 = dma.done.wait [#allocation4], 128  }
 0x12b   :  { %392 = vsyncadd [#allocation4], 4294967168 }
 0x12c   :  { %393 = dma.done.wait [#allocation10], 128  }
 0x12d   :  { %394 = vsyncadd [#allocation10], 4294967168 }
 0x12e   :  { %235 = vsyncpa [#allocation3], 1 }
 0x12f   :  { %236 = vsyncpa [#allocation6], 1 }
 0x130   :  { %237 = vsyncpa [#allocation4], 1 }
 0x131   :  { %238 = vsyncpa [#allocation10], 1 }

</bundles_post_ra>
